<compile_context>
chip_gen: v5e
topology: v5e:2x2
jax: 0.10.0
libtpu: 0.0.40
codegen_flags: <defaults>
</compile_context>

<pallas_src>
import functools

import jax
import jax.numpy as jnp
from jax import lax
from jax.experimental import pallas as pl
from jax.experimental.pallas import tpu as pltpu


def _round_up(x, m):
    return ((x + m - 1) // m) * m


def _vmem_ceiling_bytes():
    """Per-generation VMEM ceiling (leave ~25% headroom for Mosaic internals)."""
    cap = 64 * 1024 * 1024
    try:
        info = pltpu.get_tpu_info()
        cap = int(getattr(info, "vmem_capacity_bytes", cap))
    except Exception:
        pass
    return int(min((cap * 3) // 4, 100 * 1024 * 1024))


def _conv_bn_act_kernel(x_ref, w_ref, b_ref, m_ref, o_ref, tap_ref,
                        *, W, K, off, hw_tile):
    # x_ref  : (C, 2*off + HW_pad)  one image, zero-halo-padded, spatially flattened
    # w_ref  : (Cout, K*K*C) bf16   BN-folded weights, tap-major stacking
    # b_ref  : (Cout, 1)     f32    folded BN bias
    # m_ref  : (K, hw_tile)  f32    per-kw W-edge masks for this output tile
    # o_ref  : (Cout, hw_tile)      output tile (lane-dense)
    # tap_ref: (K*K*C, hw_tile) f32 stacked-tap scratch
    pad = K // 2
    C = x_ref.shape[0]
    t = pl.program_id(1)

    # Tile + halo window of the padded image: dynamic but 128-aligned start;
    # the per-tap shifts below are then static lane offsets of this value.
    start = pl.multiple_of(t * hw_tile, 128)
    xw = x_ref[:, pl.ds(start, hw_tile + 2 * off)]            # (C, hw_tile+2*off)

    # Stack the K*K shifted taps along the contraction dimension.  Row-crossing
    # in W is masked per-kw while stacking (H edges come for free from the
    # zero halo / host zero-padding).
    for kh in range(K):
        for kw in range(K):
            delta = (kh - pad) * W + (kw - pad)
            xs = xw[:, off + delta: off + delta + hw_tile]    # (C, hw_tile)
            if kw != pad:
                xs = xs * m_ref[kw:kw + 1, :]
            r = (kh * K + kw) * C
            tap_ref[r:r + C, :] = xs

    # One big-contraction bf16 matmul on the MXU, f32 accumulation.
    acc = jnp.dot(w_ref[...], tap_ref[...].astype(jnp.bfloat16),
                  preferred_element_type=jnp.float32)         # (Cout, hw_tile)

    # Folded-BN bias + ReLU epilogue.
    o_ref[...] = jnp.maximum(acc + b_ref[...], 0.0).astype(o_ref.dtype)


def conv_bn_act(x_nchw, conv_w, bn, *, eps=1e-5):
    """ConvBnAct forward (eval mode).

    x_nchw : (B, C, H, W) f32
    conv_w : (Cout, C, K, K) f32 (no conv bias, as in timm)
    bn     : dict with gamma, beta, mean, var, each (Cout,)
    returns: (B, Cout, H, W) f32
    """
    B, C, H, W = x_nchw.shape
    Cout, Cin, K, K2 = conv_w.shape
    assert Cin == C and K == K2 and K % 2 == 1, "stride=1, odd kernel only"
    HW = H * W
    pad = K // 2
    KKC = K * K * C

    # ---- tiling ------------------------------------------------------------
    off = max(128, _round_up(pad * (W + 1), 128))   # 128-aligned halo >= pad*(W+1)
    hw_tile = min(_round_up(HW, 128), 512)          # lane-dense tile; acc fits vregs
    HW_pad = _round_up(HW, hw_tile)
    T = HW_pad // hw_tile
    WFULL = 2 * off + HW_pad

    # ---- host-side parameter folding (tiny tensors, done once under jit) ----
    s = bn["gamma"] / jnp.sqrt(bn["var"] + eps)                     # (Cout,)
    w_folded = conv_w * s[:, None, None, None]                      # (Cout,C,K,K)
    # stacked layout: row index = (kh*K + kw)*C + c  (tap-major, channel-minor)
    w_stacked = jnp.transpose(w_folded, (0, 2, 3, 1)).reshape(Cout, KKC)
    w_stacked = w_stacked.astype(jnp.bfloat16)                      # bf16 MXU path
    bias = (bn["beta"] - bn["mean"] * s).reshape(Cout, 1).astype(jnp.float32)

    # Per-kw W-edge masks over flattened output positions.
    wpos = jnp.arange(HW_pad, dtype=jnp.int32) % W
    mask_arr = jnp.stack(
        [((wpos + (kw - pad) >= 0) & (wpos + (kw - pad) <= W - 1)).astype(jnp.float32)
         for kw in range(K)], axis=0)                               # (K, HW_pad)

    # Zero-halo-padded, flattened input (one cheap XLA pad; the kernel never
    # copies the image inside VMEM).
    x_flat = x_nchw.reshape(B, C, HW)
    x_padded = jnp.pad(x_flat, ((0, 0), (0, 0), (off, WFULL - off - HW)))

    # ---- VMEM budget (actual footprint + ~50% headroom, per-gen ceiling) ----
    need = (2 * C * WFULL * 4              # x block (double-buffered)
            + 2 * Cout * KKC * 2           # weights (bf16)
            + 2 * Cout * 4                 # bias
            + 2 * K * hw_tile * 4          # mask tile
            + 2 * Cout * hw_tile * 4       # output tile
            + KKC * hw_tile * 4            # stacked-tap scratch (f32)
            + KKC * hw_tile * 2            # bf16 cast of the tap buffer
            + C * (hw_tile + 2 * off) * 4  # tile+halo window value
            + 4 * C * hw_tile * 4          # unrolled tap temporaries
            + 2 * Cout * hw_tile * 4)      # matmul acc / epilogue temporaries
    vmem_limit = int(min(max(int(need * 1.5), 16 * 1024 * 1024),
                         _vmem_ceiling_bytes()))

    cost = pl.CostEstimate(
        flops=2 * B * Cout * KKC * HW_pad,
        transcendentals=0,
        bytes_accessed=(4 * B * C * WFULL + 4 * B * Cout * HW_pad
                        + 2 * Cout * KKC + 4 * K * HW_pad))

    kernel = functools.partial(_conv_bn_act_kernel,
                               W=W, K=K, off=off, hw_tile=hw_tile)

    out = pl.pallas_call(
        kernel,
        out_shape=jax.ShapeDtypeStruct((B, Cout, HW_pad), jnp.float32),
        grid_spec=pltpu.PrefetchScalarGridSpec(
            num_scalar_prefetch=0,
            grid=(B, T),
            in_specs=[
                # Full padded image per batch index (re-DMA'd only when b changes).
                pl.BlockSpec((None, C, WFULL), lambda b, t: (b, 0, 0)),
                pl.BlockSpec((Cout, KKC), lambda b, t: (0, 0)),
                pl.BlockSpec((Cout, 1), lambda b, t: (0, 0)),
                pl.BlockSpec((K, hw_tile), lambda b, t: (0, t)),
            ],
            out_specs=pl.BlockSpec((None, Cout, hw_tile), lambda b, t: (b, 0, t)),
            scratch_shapes=[pltpu.VMEM((KKC, hw_tile), jnp.float32)],
        ),
        compiler_params=pltpu.CompilerParams(
            dimension_semantics=("parallel", "parallel"),
            vmem_limit_bytes=vmem_limit),
        cost_estimate=cost,
    )(x_padded, w_stacked, bias, mask_arr)

    return out[:, :, :HW].reshape(B, Cout, H, W)


def _reference(x_nchw, conv_w, bn, eps=1e-5):
    """Pure-JAX reference matching PyTorch ConvBnAct semantics (eval mode)."""
    pad = conv_w.shape[-1] // 2
    y = lax.conv_general_dilated(
        x_nchw, conv_w, window_strides=(1, 1),
        padding=((pad, pad), (pad, pad)),
        dimension_numbers=("NCHW", "OIHW", "NCHW"))
    s = bn["gamma"] / jnp.sqrt(bn["var"] + eps)
    y = y * s[None, :, None, None] + (bn["beta"] - bn["mean"] * s)[None, :, None, None]
    return jnp.maximum(y, 0.0)


if __name__ == "__main__":
    B, C, H, W = 2, 4, 16, 16
    Cout, K = 8, 3

    key = jax.random.PRNGKey(0)
    kx, kwt, kg, kb, km, kv = jax.random.split(key, 6)

    x = jax.random.normal(kx, (B, C, H, W), dtype=jnp.float32)
    conv_w = jax.random.normal(kwt, (Cout, C, K, K), dtype=jnp.float32) * 0.2
    bn = dict(
        gamma=jax.random.normal(kg, (Cout,), jnp.float32) * 0.1 + 1.0,
        beta=jax.random.normal(kb, (Cout,), jnp.float32) * 0.1,
        mean=jax.random.normal(km, (Cout,), jnp.float32) * 0.1,
        var=jnp.abs(jax.random.normal(kv, (Cout,), jnp.float32)) * 0.1 + 0.5,
    )

    out = jax.block_until_ready(conv_bn_act(x, conv_w, bn))
    ref = jax.block_until_ready(_reference(x, conv_w, bn))

    assert out.shape == (B, Cout, H, W)
    # bf16 MXU operands (f32 accumulation): tolerance vs. the f32 reference is
    # relaxed accordingly.
    assert jnp.allclose(out, ref, atol=5e-2, rtol=5e-2), "mismatch vs reference"

    print("KERNEL_OK")
</pallas_src>

<mosaic_0001>
module attributes {stable_mosaic.version = 11 : i64} {
  func.func @_conv_bn_act_kernel(%arg0: i32, %arg1: i32, %arg2: memref<1x4x512xf32, #tpu.memory_space<vmem>>, %arg3: memref<8x36xbf16, #tpu.memory_space<vmem>>, %arg4: memref<8x1xf32, #tpu.memory_space<vmem>>, %arg5: memref<3x256xf32, #tpu.memory_space<vmem>>, %arg6: memref<1x8x256xf32, #tpu.memory_space<vmem>>, %arg7: memref<36x256xf32, #tpu.memory_space<vmem>>) attributes {dimension_semantics = [#tpu.dimension_semantics<parallel>, #tpu.dimension_semantics<parallel>], iteration_bounds = array<i64: 2, 1>, scalar_prefetch = 0 : i64, scratch_operands = 1 : i64, tpu.core_type = #tpu.core_type<tc>, window_params = [{transform_indices = @transform_0, window_bounds = array<i64: 1, 4, 512>}, {pipeline_mode = #tpu.pipeline_mode<synchronous>, transform_indices = @transform_1, window_bounds = array<i64: 8, 36>}, {pipeline_mode = #tpu.pipeline_mode<synchronous>, transform_indices = @transform_2, window_bounds = array<i64: 8, 1>}, {transform_indices = @transform_3, window_bounds = array<i64: 3, 256>}, {transform_indices = @transform_4, window_bounds = array<i64: 1, 8, 256>}]} {
    %c256_i32 = arith.constant 256 : i32
    %0 = arith.muli %arg1, %c256_i32 : i32
    %1 = tpu.assume_multiple %0, 128 : i32
    %c0 = arith.constant 0 : index
    %c0_0 = arith.constant 0 : index
    %2 = arith.index_cast %1 : i32 to index
    %3 = vector.load %arg2[%c0, %c0_0, %2] : memref<1x4x512xf32, #tpu.memory_space<vmem>>, vector<1x4x512xf32>
    %4 = vector.shape_cast %3 : vector<1x4x512xf32> to vector<4x512xf32>
    %5 = vector.extract_strided_slice %4 {offsets = [0, 111], sizes = [4, 256], strides = [1, 1]} : vector<4x512xf32> to vector<4x256xf32>
    %c0_1 = arith.constant 0 : index
    %c0_2 = arith.constant 0 : index
    %6 = vector.load %arg5[%c0_1, %c0_2] : memref<3x256xf32, #tpu.memory_space<vmem>>, vector<1x256xf32>
    %7 = vector.broadcast %6 : vector<1x256xf32> to vector<4x256xf32>
    %8 = arith.mulf %5, %7 : vector<4x256xf32>
    %c0_3 = arith.constant 0 : index
    %c0_4 = arith.constant 0 : index
    %9 = vector.load %arg7[%c0_3, %c0_4] : memref<36x256xf32, #tpu.memory_space<vmem>>, vector<4x256xf32>
    tpu.vector_store %arg7[%c0_3, %c0_4], %8 {strides = array<i32>} : memref<36x256xf32, #tpu.memory_space<vmem>>, vector<4x256xf32>,
    %10 = vector.extract_strided_slice %4 {offsets = [0, 112], sizes = [4, 256], strides = [1, 1]} : vector<4x512xf32> to vector<4x256xf32>
    %c4 = arith.constant 4 : index
    %c0_5 = arith.constant 0 : index
    %11 = vector.load %arg7[%c4, %c0_5] : memref<36x256xf32, #tpu.memory_space<vmem>>, vector<4x256xf32>
    tpu.vector_store %arg7[%c4, %c0_5], %10 {strides = array<i32>} : memref<36x256xf32, #tpu.memory_space<vmem>>, vector<4x256xf32>,
    %12 = vector.extract_strided_slice %4 {offsets = [0, 113], sizes = [4, 256], strides = [1, 1]} : vector<4x512xf32> to vector<4x256xf32>
    %c2 = arith.constant 2 : index
    %c0_6 = arith.constant 0 : index
    %13 = vector.load %arg5[%c2, %c0_6] : memref<3x256xf32, #tpu.memory_space<vmem>>, vector<1x256xf32>
    %14 = vector.broadcast %13 : vector<1x256xf32> to vector<4x256xf32>
    %15 = arith.mulf %12, %14 : vector<4x256xf32>
    %c8 = arith.constant 8 : index
    %c0_7 = arith.constant 0 : index
    %16 = vector.load %arg7[%c8, %c0_7] : memref<36x256xf32, #tpu.memory_space<vmem>>, vector<4x256xf32>
    tpu.vector_store %arg7[%c8, %c0_7], %15 {strides = array<i32>} : memref<36x256xf32, #tpu.memory_space<vmem>>, vector<4x256xf32>,
    %17 = vector.extract_strided_slice %4 {offsets = [0, 127], sizes = [4, 256], strides = [1, 1]} : vector<4x512xf32> to vector<4x256xf32>
    %c0_8 = arith.constant 0 : index
    %c0_9 = arith.constant 0 : index
    %18 = vector.load %arg5[%c0_8, %c0_9] : memref<3x256xf32, #tpu.memory_space<vmem>>, vector<1x256xf32>
    %19 = vector.broadcast %18 : vector<1x256xf32> to vector<4x256xf32>
    %20 = arith.mulf %17, %19 : vector<4x256xf32>
    %c12 = arith.constant 12 : index
    %c0_10 = arith.constant 0 : index
    %21 = vector.load %arg7[%c12, %c0_10] : memref<36x256xf32, #tpu.memory_space<vmem>>, vector<4x256xf32>
    tpu.vector_store %arg7[%c12, %c0_10], %20 {strides = array<i32>} : memref<36x256xf32, #tpu.memory_space<vmem>>, vector<4x256xf32>,
    %22 = vector.extract_strided_slice %4 {offsets = [0, 128], sizes = [4, 256], strides = [1, 1]} : vector<4x512xf32> to vector<4x256xf32>
    %c16 = arith.constant 16 : index
    %c0_11 = arith.constant 0 : index
    %23 = vector.load %arg7[%c16, %c0_11] : memref<36x256xf32, #tpu.memory_space<vmem>>, vector<4x256xf32>
    tpu.vector_store %arg7[%c16, %c0_11], %22 {strides = array<i32>} : memref<36x256xf32, #tpu.memory_space<vmem>>, vector<4x256xf32>,
    %24 = vector.extract_strided_slice %4 {offsets = [0, 129], sizes = [4, 256], strides = [1, 1]} : vector<4x512xf32> to vector<4x256xf32>
    %c2_12 = arith.constant 2 : index
    %c0_13 = arith.constant 0 : index
    %25 = vector.load %arg5[%c2_12, %c0_13] : memref<3x256xf32, #tpu.memory_space<vmem>>, vector<1x256xf32>
    %26 = vector.broadcast %25 : vector<1x256xf32> to vector<4x256xf32>
    %27 = arith.mulf %24, %26 : vector<4x256xf32>
    %c20 = arith.constant 20 : index
    %c0_14 = arith.constant 0 : index
    %28 = vector.load %arg7[%c20, %c0_14] : memref<36x256xf32, #tpu.memory_space<vmem>>, vector<4x256xf32>
    tpu.vector_store %arg7[%c20, %c0_14], %27 {strides = array<i32>} : memref<36x256xf32, #tpu.memory_space<vmem>>, vector<4x256xf32>,
    %29 = vector.extract_strided_slice %4 {offsets = [0, 143], sizes = [4, 256], strides = [1, 1]} : vector<4x512xf32> to vector<4x256xf32>
    %c0_15 = arith.constant 0 : index
    %c0_16 = arith.constant 0 : index
    %30 = vector.load %arg5[%c0_15, %c0_16] : memref<3x256xf32, #tpu.memory_space<vmem>>, vector<1x256xf32>
    %31 = vector.broadcast %30 : vector<1x256xf32> to vector<4x256xf32>
    %32 = arith.mulf %29, %31 : vector<4x256xf32>
    %c24 = arith.constant 24 : index
    %c0_17 = arith.constant 0 : index
    %33 = vector.load %arg7[%c24, %c0_17] : memref<36x256xf32, #tpu.memory_space<vmem>>, vector<4x256xf32>
    tpu.vector_store %arg7[%c24, %c0_17], %32 {strides = array<i32>} : memref<36x256xf32, #tpu.memory_space<vmem>>, vector<4x256xf32>,
    %34 = vector.extract_strided_slice %4 {offsets = [0, 144], sizes = [4, 256], strides = [1, 1]} : vector<4x512xf32> to vector<4x256xf32>
    %c28 = arith.constant 28 : index
    %c0_18 = arith.constant 0 : index
    %35 = vector.load %arg7[%c28, %c0_18] : memref<36x256xf32, #tpu.memory_space<vmem>>, vector<4x256xf32>
    tpu.vector_store %arg7[%c28, %c0_18], %34 {strides = array<i32>} : memref<36x256xf32, #tpu.memory_space<vmem>>, vector<4x256xf32>,
    %36 = vector.extract_strided_slice %4 {offsets = [0, 145], sizes = [4, 256], strides = [1, 1]} : vector<4x512xf32> to vector<4x256xf32>
    %c2_19 = arith.constant 2 : index
    %c0_20 = arith.constant 0 : index
    %37 = vector.load %arg5[%c2_19, %c0_20] : memref<3x256xf32, #tpu.memory_space<vmem>>, vector<1x256xf32>
    %38 = vector.broadcast %37 : vector<1x256xf32> to vector<4x256xf32>
    %39 = arith.mulf %36, %38 : vector<4x256xf32>
    %c32 = arith.constant 32 : index
    %c0_21 = arith.constant 0 : index
    %40 = vector.load %arg7[%c32, %c0_21] : memref<36x256xf32, #tpu.memory_space<vmem>>, vector<4x256xf32>
    tpu.vector_store %arg7[%c32, %c0_21], %39 {strides = array<i32>} : memref<36x256xf32, #tpu.memory_space<vmem>>, vector<4x256xf32>,
    %c0_22 = arith.constant 0 : index
    %c0_23 = arith.constant 0 : index
    %41 = vector.load %arg3[%c0_22, %c0_23] : memref<8x36xbf16, #tpu.memory_space<vmem>>, vector<8x36xbf16>
    %c0_24 = arith.constant 0 : index
    %c0_25 = arith.constant 0 : index
    %42 = vector.load %arg7[%c0_24, %c0_25] : memref<36x256xf32, #tpu.memory_space<vmem>>, vector<36x256xf32>
    %43 = arith.truncf %42 : vector<36x256xf32> to vector<36x256xbf16>
    %cst = arith.constant dense<0.000000e+00> : vector<8x256xf32>
    %44 = tpu.matmul %41, %43, %cst {dimension_numbers = #tpu.dot_dimension_numbers<[1], [0], [0], [1], [0, 0, 1, 1], [], []>} : vector<8x36xbf16>, vector<36x256xbf16>, vector<8x256xf32> -> vector<8x256xf32>
    %c0_26 = arith.constant 0 : index
    %c0_27 = arith.constant 0 : index
    %45 = vector.load %arg4[%c0_26, %c0_27] : memref<8x1xf32, #tpu.memory_space<vmem>>, vector<8x1xf32>
    %46 = vector.broadcast %45 : vector<8x1xf32> to vector<8x256xf32>
    %47 = arith.addf %44, %46 : vector<8x256xf32>
    %cst_28 = arith.constant 0.000000e+00 : f32
    %48 = vector.broadcast %cst_28 : f32 to vector<8x256xf32>
    %49 = arith.maximumf %47, %48 : vector<8x256xf32>
    %c0_29 = arith.constant 0 : index
    %c0_30 = arith.constant 0 : index
    %c0_31 = arith.constant 0 : index
    %50 = vector.load %arg6[%c0_29, %c0_30, %c0_31] : memref<1x8x256xf32, #tpu.memory_space<vmem>>, vector<1x8x256xf32>
    %51 = vector.shape_cast %50 : vector<1x8x256xf32> to vector<8x256xf32>
    %52 = vector.shape_cast %49 : vector<8x256xf32> to vector<1x8x256xf32>
    tpu.vector_store %arg6[%c0_29, %c0_30, %c0_31], %52 {strides = array<i32>} : memref<1x8x256xf32, #tpu.memory_space<vmem>>, vector<1x8x256xf32>,
    return
  }
  func.func @transform_0(%arg0: i32, %arg1: i32) -> (i32, i32, i32) {
    %c0_i32 = arith.constant 0 : i32
    %c0_i32_0 = arith.constant 0 : i32
    %c0_i32_1 = arith.constant 0 : i32
    return %arg0, %c0_i32, %c0_i32_0 : i32, i32, i32
  }
  func.func @transform_1(%arg0: i32, %arg1: i32) -> (i32, i32) {
    %c0_i32 = arith.constant 0 : i32
    %c0_i32_0 = arith.constant 0 : i32
    %c0_i32_1 = arith.constant 0 : i32
    return %c0_i32, %c0_i32_0 : i32, i32
  }
  func.func @transform_2(%arg0: i32, %arg1: i32) -> (i32, i32) {
    %c0_i32 = arith.constant 0 : i32
    %c0_i32_0 = arith.constant 0 : i32
    %c0_i32_1 = arith.constant 0 : i32
    return %c0_i32, %c0_i32_0 : i32, i32
  }
  func.func @transform_3(%arg0: i32, %arg1: i32) -> (i32, i32) {
    %c0_i32 = arith.constant 0 : i32
    %c0_i32_0 = arith.constant 0 : i32
    return %c0_i32, %arg1 : i32, i32
  }
  func.func @transform_4(%arg0: i32, %arg1: i32) -> (i32, i32, i32) {
    %c0_i32 = arith.constant 0 : i32
    %c0_i32_0 = arith.constant 0 : i32
    return %arg0, %c0_i32, %arg1 : i32, i32, i32
  }
}

</mosaic_0001>

<bundles_post_ra>
// kernel: tpu_custom_call.1
= control target key start
LH: loop header
LB: loop body
LE: loop exit
PB: predicated region body
PF: predicated region fallthrough
CT: control target
= control target key end

     0   :  { %9 = vsyncpa [#allocation4], 0  ;;  %s1211_s0 = inlined_call_operand.hbm [shape: f32[2,4,512], index: 0, kind: input, shape index: {}]   ;;  %s1212_s1 = inlined_call_operand.hbm [shape: bf16[8,36], index: 1, kind: input, shape index: {}]   ;;  %s1213_s2 = inlined_call_operand.vmem [shape: f32[8,1], index: 2, kind: input, shape index: {}]   ;;  %s1214_s3 = inlined_call_operand.vmem [shape: f32[3,256], index: 3, kind: input, shape index: {}]   ;;  %s1215_s4 = inlined_call_operand.hbm [shape: f32[2,8,256], index: 4, kind: output, shape index: {}]  }
   0x1   :  { %11 = vsyncpa [#allocation4 + $0x1], 0 }
   0x2   :  { %12 = vsyncpa [#allocation7], 0 }
   0x3   :  { %13 = vsyncpa [#allocation5], 0 }
   0x4   :  { %15 = vsyncpa [#allocation5 + $0x1], 0  ;;  %s996_s15 = smov 0   ;;  %s998_s16 = smov 0  }
   0x5   :  { %s1000_s17 = smov 0   ;;  %s1002_s18 = smov 0  }
   0x6   :  { %s1004_s19 = smov 0   ;;  %s1006_s20 = smov 0  }
   0x7 LB: > { %s705_s21 = sadd.s32 4294967295, %s959_s20   ;;  %s706_s22 = sadd.s32 4294967294, %s959_s20   ;;  %s959_s20 = sphi %s1006_s20, %s21_s20   ;;  %s955_s19 = sphi %s1004_s19, %s1227_s19   ;;  %s951_s18 = sphi %s1002_s18, %s1226_s18   ;;  %s947_s17 = sphi %s1000_s17, %s1225_s17   ;;  %s943_s16 = sphi %s998_s16, %s1224_s16   ;;  %s939_s15 = sphi %s996_s15, %s1223_s15  }
   0x8   : > { %p53_p0 = scmp.ne.s32.totalorder %s943_s16, %s939_s15  ;;  %p1030_p1 = scmp.eq.s32.totalorder %s705_s21, 0 }
   0x9   : > { %p1034_p2 = scmp.eq.s32.totalorder %s705_s21, 1  ;;  %p153_p3 = scmp.eq.s32.totalorder %s706_s22, 1 }
   0xa   : > { %p1040_p4 = por %p1030_p1, %p53_p0  ;;  %p707_p5 = scmp.ge.s32.totalorder %s959_s20, 1 }
   0xb   : > { %p1045_p6 = por %p153_p3, %p53_p0  ;;  %p160_p7 = scmp.lt.s32.totalorder %s959_s20, 3 }
   0xc   : > { %s172_s29 = sshll.u32 %s1212_s1, 4  ;;  %p710_p9 = scmp.ge.s32.totalorder %s959_s20, 2  ;;  %s173_s29 = int_to_ptr.hbm [resolvable:$true] %s172_s29 }
   0xd   : > { %p1053_p8 = pnand %p707_p5, %p160_p7  ;;  %s961_s5 = smov [#allocation6]  }
   0xe   : > { %s174_s6 = sshll.u32 %s961_s5, 4  ;;  %s33_s7 = sadd.s32 1, %s955_s19  ;;  %s175_s6 = int_to_ptr.vmem [resolvable:$true] %s174_s6 }
   0xf   : > { %p738_p10 = pneg %p1053_p8  ;;  %p35_p12 = scmp.ge.s32.totalorder %s33_s7, 2 }
  0x10   : > { %s40_s8 = sadd.s32 1, %s947_s17  ;;  %p47_p13 = scmp.ne.s32.totalorder %s947_s17, %s943_s16 }
  0x11   : > { %p739_p11 = pnand %p738_p10, %p1030_p1  ;;  %p48_p0 = scmp.eq.s32.totalorder %s959_s20, 0 }
  0x12   : > { %s1229_s7 = smov (%p35_p12, %s33_s7), 0  ;;  %p1075_p5 = por %p1034_p2, %p47_p13 }
  0x13   : > { %741 = dma.hbm_to_vmem [thread:$0]  (!%p739_p11), %s173_s29, 64, %s175_s6, [#allocation7]  }
  0x14   : > { %p1069_p3 = por %p48_p0, %p47_p13  ;;  %s37_s11 = ssub.s32 %s955_s19, %s1229_s7 }
  0x15   : > { %p751_p7 = scmp.lt.s32.totalorder %s959_s20, 2  ;;  %p38_p10 = scmp.eq.s32.totalorder %s37_s11, 0 }
  0x16   : > { %s197_s12 = sand.u32 1, %s947_s17   ;;  %s728_s21 = sshll.u32 %s955_s19, 4 }
  0x17   : > { %s711_s13 = sshll.u32 %s197_s12, 4  ;;  %s206_s28 = scalar_lea.hbm %s1211_s0, %s728_s21 }
  0x18   : > { %s1084_s14 = scalar_select %p38_p10, %s947_s17, %s40_s8  }
  0x19   : > { %s201_s29 = scalar_lea.vmem [#allocation3], %s711_s13  ;;  %s208_s24 = sshll.u32 %s206_s28, 4  ;;  %s209_s24 = int_to_ptr.hbm [resolvable:$true] %s208_s24 }
  0x1a   : > { %s210_s5 = sshll.u32 %s201_s29, 4  ;;  %p743_p2 = pnand %p751_p7, %p1069_p3  ;;  %s211_s5 = int_to_ptr.vmem [resolvable:$true] %s210_s5 }
  0x1b   : > { %s198_s6 = scalar_lea.sflag [#allocation4], %s197_s12  ;;  %219 = sbr.rel (%p1053_p8) target bundleno = 499 (0x1f3), region = 36 }
  0x1c   : > { %745 = dma.hbm_to_vmem [thread:$0]  (!%p743_p2), %s209_s24, 256, %s211_s5, %s198_s6  }
  0x1d   : > { %s1095_s8 = sand.u32 (!%p1053_p8), 1, %s943_s16  }
  0x1e   : > { %s715_s11 = sshll.u32 (!%p1053_p8), %s1095_s8, 4  ;;  %s222_s13 = scalar_lea.sflag (!%p1053_p8), [#allocation4], %s1095_s8 }
  0x1f   : > { %s225_s21 = scalar_lea.vmem (!%p1053_p8), [#allocation3], %s715_s11 }
  0x20   : > { %926 = dma.done.wait (%p1040_p4), %s222_s13, 256  }
  0x21   : > { %928 = vsyncadd (%p1040_p4), %s222_s13, 4294967040 }
  0x22   : > { %930 = dma.done.wait (%p1030_p1), [#allocation7], 64  }
  0x23   : > { %932 = vsyncadd (%p1030_p1), [#allocation7], 4294967232  ;;  %v276_v0 = vld [vmem:[%s1214_s3] ss:$4 sm:$0x3]  ;;  %vm281_vm0 = vcmask 1043456  }
  0x24   : > { %v718_v1 = vld [vmem:[%s1214_s3 + $0x2] ss:$4 sm:$0x3]  ;;  %v278_v2 = vperm.slane %v276_v0, 0  ;;  %v279_v3 = vperm.slane %v276_v0, 1  ;;  %s962_s28 = smov 127  }
  0x25   : > { %v1115_v4 = vld [vmem:[%s225_s21 + $0x8] sm:$0xff]  ;;  %v339_v7 = vperm.slane %v718_v1, 1  ;;  %s963_s23 = smov 111   ;;  %v338_v12 = vperm.slane %v718_v1, 0  ;;  %v1123_v15 = vld [vmem:[%s225_s21] sm:$0xff]  ;;  %s964_s29 = smov 113  }
  0x26   : > { %v372_v5 = vld [vmem:[%s1214_s3] ss:$4 sm:$0x3]  ;;  %424 = vrot.lane.b32.xlu2 %v1115_v4, %s962_s28  ;;  %v280_v6 = vrot.slane %v279_v3, 4  ;;  %vm286_vm1 = vcmask 908288   ;;  %s965_s5 = smov 17  }
  0x27   : > { %v374_v8 = vperm.slane %v372_v5, 0  ;;  %v375_v9 = vperm.slane %v372_v5, 1  ;;  %v340_v13 = vrot.slane %v339_v7, 4  ;;  %vm345_vm2 = vcmask 924672   ;;  %s966_s24 = smov 16   ;;  %s967_s6 = smov 15  }
  0x28   : > { %v282_v10 = vsel %vm281_vm0, %v278_v2, %v280_v6  ;;  %vm381_vm3 = vcmask 1039360   ;;  %v719_v39 = vld [vmem:[%s1214_s3 + $0x2] ss:$4 sm:$0x3]  ;;  %s968_s12 = smov 112   ;;  %s969_s22 = smov 1  }
  0x29   : > { %v376_v11 = vrot.slane %v375_v9, 4  ;;  %283 = vrot.lane.b32.xlu0 %v282_v10, %s963_s23  ;;  %v341_v16 = vsel %vm281_vm0, %v338_v12, %v340_v13  ;;  %v421_v44 = vperm.slane %v719_v39, 1  ;;  %v420_v48 = vperm.slane %v719_v39, 0  ;;  %v444_v53 = vld [vmem:[%s1214_s3] ss:$4 sm:$0x3] }
  0x2a   : > { %v447_v58 = vperm.slane %v444_v53, 1  ;;  %v446_v63 = vperm.slane %v444_v53, 0  ;;  %vm306_vm4 = vcmask 138240   ;;  %vm328_vm5 = vcmask 130048   ;;  %s579_s9 = scalar_lea.sflag [#allocation5], %s1095_s8  ;;  %s893_s25 = scalar_lea.hbm %s1215_s4, 32 }
  0x2b   : > { %v377_v14 = vsel %vm281_vm0, %v374_v8, %v376_v11  ;;  %v431_v49 = vrot.slane %v421_v44, 4  ;;  %vm365_vm6 = vcmask 121856   ;;  %vm541_vm7 = vcmask 1041408  }
  0x2c   : > { %378 = vrot.lane.b32.xlu1 %v377_v14, %s962_s28  ;;  %v457_v0 = vrot.slane %v447_v58, 4  ;;  %vm482_vm8 = vcmask 916480   ;;  %vm402_vm9 = vcmask 7168   ;;  %v970_v58 = vmov 0  }
  0x2d   : > { %v432_v56 = vsel %vm281_vm0, %v420_v48, %v431_v49  ;;  %812 = vset.pattern.permute.xlu0 %v970_v58  ;;  %vm537_vm10 = vcmask 293888  }
  0x2e   : > { %448 = vrot.lane.b32.xlu2 %v1123_v15, %s964_s29  ;;  %v458_v3 = vsel %vm281_vm0, %v446_v63, %v457_v0  ;;  %v514_v63 = vld [vmem:[#allocation6] sm:$0xf] }
  0x31   : > { %342 = vrot.lane.b32.xlu0 %v341_v16, %s964_s29  ;;  %v720_v16 = vld [vmem:[%s1214_s3 + $0x2] ss:$4 sm:$0x3] }
  0x34   : > { %422 = vrot.lane.b32.xlu1 %v1123_v15, %s962_s28 }
  0x36   : > { %495 = vrot.lane.b32.xlu2 %v1115_v4, %s963_s23 }
  0x39   : > { %450 = vrot.lane.b32.xlu0 %v1115_v4, %s964_s29  ;;  %s260_s29 = scalar_lea.vmem [#allocation8], %s715_s11 }
  0x3a   : > { %s594_s21 = sshll.u32 %s260_s29, 4  ;;  %s595_s21 = int_to_ptr.vmem [resolvable:$true] %s594_s21 }
  0x3c   : > { %493 = vrot.lane.b32.xlu1 %v1123_v15, %s963_s23 }
  0x80   : > { %v425_v42 = vpop.permute.xlu2 %424 }
  0x81   : > { %v427_v45 = vrot.slane %v425_v42, 4 }
  0x88   : > { %v449_v55 = vpop.permute.xlu2 %448 }
  0x89   : > { %v452_v60 = vrot.slane %v449_v55, 4 }
  0x90   : > { %v496_v13 = vpop.permute.xlu2 %495 }
  0x91   : > { %v498_v14 = vrot.slane %v496_v13, 4 }
  0x9b   : > { %v284_v17 = vpop.permute.xlu0 %283 }
  0x9c   : > { %v285_v18 = vrot.slane %v284_v17, 4 }
  0x9e   : > { %v287_v19 = vsel %vm286_vm1, %v285_v18, %v284_v17  ;;  %v291_v20 = vmul.f32 %v285_v18, %v1115_v4  ;;  %v379_v29 = vpop.permute.xlu1 %378  ;;  %v491_v18 = vperm.slane %v720_v16, 0 }
  0x9f   : > { %v290_v21 = vmul.f32 %v287_v19, %v1123_v15  ;;  %v380_v32 = vrot.slane %v379_v29, 4  ;;  %v492_v19 = vperm.slane %v720_v16, 1 }
  0xa0   : > { %296 = vst [vmem:[#allocation1 + $0x10] ss:$2 sm:$0xff] %v291_v20 }
  0xa1   : > { %294 = vst [vmem:[#allocation1] ss:$2 sm:$0xff] %v290_v21  ;;  %v386_v35 = vmul.f32 %v380_v32, %v1115_v4  ;;  %v382_v36 = vsel %vm381_vm3, %v380_v32, %v379_v29  ;;  %v502_v21 = vrot.slane %v492_v19, 4 }
  0xa2   : > { %v385_v38 = vmul.f32 %v382_v36, %v1123_v15 }
  0xa3   : > { %v343_v22 = vpop.permute.xlu0 %342 }
  0xa4   : > { %v344_v25 = vrot.slane %v343_v22, 4 }
  0xa6   : > { %v350_v27 = vmul.f32 %v344_v25, %v1115_v4  ;;  %v346_v28 = vsel %vm345_vm2, %v344_v25, %v343_v22  ;;  %v423_v43 = vpop.permute.xlu1 %422 }
  0xa7   : > { %v299_v23 = vld.sshfl [vmem:[#allocation1 + $0x10] sm:$0xff pattern:$0x75316420]  ;;  %v349_v31 = vmul.f32 %v346_v28, %v1123_v15  ;;  %v426_v46 = vrot.slane %v423_v43, 4 }
  0xa8   : > { %318 = vst [vmem:[#allocation1 + $0x11] ss:$2 sm:$0xff] %v1115_v4  ;;  %304 = vrot.lane.b32.xlu2 %v299_v23, %s965_s5  ;;  %v298_v24 = vld.sshfl [vmem:[#allocation1 + $0x8] sm:$0xff pattern:$0x75316420] }
  0xa9   : > { %302 = vrot.lane.b32.xlu1 %v298_v24, %s965_s5  ;;  %v297_v26 = vld.sshfl [vmem:[#allocation1] sm:$0xff pattern:$0x75316420]  ;;  %v428_v52 = vsel %vm281_vm0, %v426_v46, %v427_v45 }
  0xaa   : > { %300 = vrot.lane.b32.xlu0 %v297_v26, %s965_s5  ;;  %316 = vst [vmem:[#allocation1 + $0x1] ss:$2 sm:$0xff] %v1123_v15  ;;  %v429_v57 = vsel %vm381_vm3, %v428_v52, %v425_v42  ;;  %s729_s5 = sshll.u32 %s951_s18, 4 }
  0xab   : > { %v451_v54 = vpop.permute.xlu0 %450  ;;  %v434_v62 = vmul.f32 %v432_v56, %v429_v57  ;;  %v531_v57 = vld [vmem:[%s1213_s2] sm:$0xff]  ;;  %s592_s13 = scalar_lea.hbm %s1215_s4, %s729_s5 }
  0xac   : > { %v453_v59 = vrot.slane %v451_v54, 4  ;;  %s596_s30 = sshll.u32 %s592_s13, 4  ;;  %s597_s30 = int_to_ptr.hbm [resolvable:$true] %s596_s30 }
  0xae   : > { %v454_v2 = vsel %vm281_vm0, %v452_v60, %v453_v59  ;;  %v494_v17 = vpop.permute.xlu1 %493 }
  0xaf   : > { %v321_v30 = vld.sshfl [vmem:[#allocation1 + $0x10] sm:$0xff pattern:$0x75316420]  ;;  %v455_v5 = vsel %vm345_vm2, %v454_v2, %v451_v54  ;;  %v497_v20 = vrot.slane %v494_v17, 4 }
  0xb0   : > { %355 = vst [vmem:[#allocation1 + $0x10] ss:$2 sm:$0xff] %v350_v27  ;;  %326 = vrot.lane.b32.xlu2 %v321_v30, %s966_s24  ;;  %v460_v8 = vmul.f32 %v458_v3, %v455_v5 }
  0xb1   : > { %v320_v33 = vld.sshfl [vmem:[#allocation1 + $0x8] sm:$0xff pattern:$0x75316420]  ;;  %v319_v34 = vld.sshfl [vmem:[#allocation1] sm:$0xff pattern:$0x75316420]  ;;  %v499_v22 = vsel %vm281_vm0, %v497_v20, %v498_v14 }
  0xb2   : > { %324 = vrot.lane.b32.xlu1 %v320_v33, %s966_s24  ;;  %322 = vrot.lane.b32.xlu0 %v319_v34, %s966_s24  ;;  %353 = vst [vmem:[#allocation1] ss:$2 sm:$0xff] %v349_v31  ;;  %v500_v23 = vsel %vm286_vm1, %v499_v22, %v496_v13 }
  0xb7   : > { %v358_v37 = vld.sshfl [vmem:[#allocation1 + $0x10] sm:$0xff pattern:$0x75316420] }
  0xb8   : > { %392 = vst [vmem:[#allocation1 + $0x11] ss:$2 sm:$0xff] %v386_v35  ;;  %363 = vrot.lane.b32.xlu2 %v358_v37, %s967_s6 }
  0xb9   : > { %v357_v40 = vld.sshfl [vmem:[#allocation1 + $0x8] sm:$0xff pattern:$0x75316420]  ;;  %v356_v41 = vld.sshfl [vmem:[#allocation1] sm:$0xff pattern:$0x75316420] }
  0xba   : > { %361 = vrot.lane.b32.xlu1 %v357_v40, %s967_s6  ;;  %359 = vrot.lane.b32.xlu0 %v356_v41, %s967_s6  ;;  %390 = vst [vmem:[#allocation1 + $0x1] ss:$2 sm:$0xff] %v385_v38 }
  0xbf   : > { %v395_v47 = vld.sshfl [vmem:[#allocation1 + $0x10] sm:$0xff pattern:$0x75316420] }
  0xc0   : > { %411 = vst [vmem:[#allocation1 + $0x10] ss:$2 sm:$0xff] %v1115_v4 }
  0xc1   : > { %v393_v50 = vld.sshfl [vmem:[#allocation1] sm:$0xff pattern:$0x75316420]  ;;  %v394_v51 = vld.sshfl [vmem:[#allocation1 + $0x8] sm:$0xff pattern:$0x75316420] }
  0xc2   : > { %409 = vst [vmem:[#allocation1] ss:$2 sm:$0xff] %v1123_v15 }
  0xc7   : > { %v413_v61 = vld.sshfl [vmem:[#allocation1 + $0x10] sm:$0xff pattern:$0x75316420] }
  0xc8   : > { %472 = vst [vmem:[#allocation1 + $0x11] ss:$2 sm:$0xff] %v1115_v4 }
  0xc9   : > { %417 = vst [vmem:[#allocation2 + $0x28] sm:$0xf] %v413_v61  ;;  %v412_v1 = vld.sshfl [vmem:[#allocation1 + $0x8] sm:$0xff pattern:$0x75316420] }
  0xca   : > { %437 = vst [vmem:[#allocation1 + $0x1] ss:$2 sm:$0xff] %v434_v62 }
  0xcb   : > { %416 = vst [vmem:[#allocation2 + $0x48] sm:$0xf] %v412_v1 }
  0xcf   : > { %v475_v6 = vld.sshfl [vmem:[#allocation1 + $0x18] sm:$0xff pattern:$0x75316420]  ;;  %v474_v7 = vld.sshfl [vmem:[#allocation1 + $0x10] sm:$0xff pattern:$0x75316420] }
  0xd0   : > { %480 = vrot.lane.b32.xlu2 %v475_v6, %s968_s12  ;;  %478 = vrot.lane.b32.xlu1 %v474_v7, %s968_s12 }
  0xd1   : > { %v438_v4 = vld.sshfl [vmem:[#allocation1] sm:$0xff pattern:$0x75316420]  ;;  %v439_v9 = vld.sshfl [vmem:[#allocation1 + $0x8] sm:$0xff pattern:$0x75316420] }
  0xd2   : > { %462 = vst [vmem:[#allocation1] ss:$2 sm:$0xff] %v460_v8 }
  0xd3   : > { %442 = vst [vmem:[#allocation2 + $0x48] sm:$0xf0] %v438_v4 }
  0xd4   : > { %443 = vst [vmem:[#allocation2 + $0x28] sm:$0xf0] %v439_v9 }
  0xd8   : > { %400 = vrot.lane.b32.xlu2 %v395_v47, %s969_s22  ;;  %398 = vrot.lane.b32.xlu1 %v394_v51, %s969_s22 }
  0xd9   : > { %v463_v10 = vld.sshfl [vmem:[#allocation1] sm:$0xff pattern:$0x75316420]  ;;  %v464_v11 = vld.sshfl [vmem:[#allocation1 + $0x8] sm:$0xff pattern:$0x75316420] }
  0xda   : > { %467 = vst [vmem:[#allocation2 + $0x8] sm:$0xf] %v463_v10  ;;  %v519_v3 = vld [vmem:[#allocation2 + $0x48] sm:$0xff] }
  0xdb   : > { %468 = vst [vmem:[#allocation2 + $0x20] sm:$0xf] %v464_v11  ;;  %v520_v54 = vld [vmem:[#allocation2 + $0x28] sm:$0xff] }
  0xdc   : > { %470 = vst [vmem:[#allocation1 + $0x1] ss:$2 sm:$0xff] %v1123_v15  ;;  %v503_v15 = vsel %vm281_vm0, %v491_v18, %v502_v21 }
  0xdd   : > { %v505_v24 = vmul.f32 %v503_v15, %v500_v23 }
  0xe3   : > { %v473_v12 = vld.sshfl [vmem:[#allocation1 + $0x8] sm:$0xff pattern:$0x75316420] }
  0xe4   : > { %476 = vrot.lane.b32.xlu0 %v473_v12, %s968_s12  ;;  %507 = vst [vmem:[#allocation1] ss:$2 sm:$0xff] %v505_v24  ;;  %s887_s12 = sshra.s32 %s597_s30, 4  ;;  %s888_s12 = int_to_ptr.hbm [resolvable:$true] %s887_s12 }
  0xe5   : > { %s889_s11 = scalar_lea.hbm %s888_s12, 16  ;;  %p894_p11 = scmp.lt.s32.totalorder %s888_s12, %s1215_s4 }
  0xe6   : > { %p890_p1 = scmp.ne.s32.totalorder %s888_s12, %s889_s11  ;;  %p895_p12 = scmp.lt.s32.totalorder %s893_s25, %s889_s11 }
  0xe8   : > { %p891_p4 = pnand %p890_p1, %p1075_p5  ;;  %p896_p13 = por %p895_p12, %p894_p11 }
  0xea   : > { %p892_p8 = pneg %p891_p4 }
  0xeb   : > { %v508_v31 = vld.sshfl [vmem:[#allocation1] sm:$0xff pattern:$0x75316420]  ;;  %v509_v32 = vld.sshfl [vmem:[#allocation1 + $0x8] sm:$0xff pattern:$0x75316420] }
  0xec   : > { %396 = vrot.lane.b32.xlu0 %v393_v50, %s969_s22  ;;  %512 = vst [vmem:[#allocation2 + $0x40] sm:$0xf] %v508_v31  ;;  %p897_p0 = pnand %p896_p13, %p892_p8 }
  0xed   : > { %513 = vst [vmem:[#allocation2 + $0x38] sm:$0xf] %v509_v32 }
  0xf3   : > { %v523_v37 = vld [vmem:[#allocation2 + $0x40] sm:$0xf] }
  0xf4   : > { %v529_v38 = vpack.c.bf16 %v523_v37, %v523_v37  ;;  %v524_v39 = vld [vmem:[#allocation2 + $0x38] sm:$0xf]  ;;  %534 = vperm.xlu0 %812, %v531_v57  }
  0xf5   : > { %v530_v41 = vpack.c.bf16 %v524_v39, %v524_v39 }
  0xf6   : > { %v543_v44 = vsel %vm541_vm7, %v529_v38, 0 }
  0xf7   : > { %553 = vmatpush.bf16.msra.mxu0 %v543_v44  ;;  %v546_v47 = vsel %vm541_vm7, %v530_v41, 0 }
  0xf8   : > { %566 = vmatpush.bf16.msra.mxu1 %v546_v47 }
 0x102   : > { %v305_v25 = vpop.permute.xlu2 %304 }
 0x10a   : > { %v327_v30 = vpop.permute.xlu2 %326 }
 0x112   : > { %v364_v40 = vpop.permute.xlu2 %363 }
 0x11b   : > { %v303_v26 = vpop.permute.xlu1 %302 }
 0x11c   : > { %v308_v27 = vsel %vm306_vm4, %v303_v26, %v305_v25  ;;  %v301_v28 = vpop.permute.xlu0 %300 }
 0x11d   : > { %312 = vst [vmem:[#allocation2] sm:$0xf] %v308_v27  ;;  %v307_v29 = vsel %vm306_vm4, %v301_v28, %v303_v26 }
 0x11e   : > { %311 = vst [vmem:[#allocation2 + $0x30] sm:$0xf] %v307_v29 }
 0x124   : > { %v325_v33 = vpop.permute.xlu1 %324  ;;  %v323_v34 = vpop.permute.xlu0 %322 }
 0x125   : > { %v330_v35 = vsel %vm328_vm5, %v325_v33, %v327_v30  ;;  %v329_v36 = vsel %vm328_vm5, %v323_v34, %v325_v33 }
 0x126   : > { %334 = vst [vmem:[#allocation2] sm:$0xf0] %v330_v35 }
 0x127   : > { %333 = vst [vmem:[#allocation2 + $0x30] sm:$0xf0] %v329_v36 }
 0x12a   : > { %v481_v48 = vpop.permute.xlu2 %480 }
 0x12c   : > { %v362_v42 = vpop.permute.xlu1 %361  ;;  %v360_v43 = vpop.permute.xlu0 %359 }
 0x12d   : > { %v367_v45 = vsel %vm365_vm6, %v362_v42, %v364_v40  ;;  %v366_v46 = vsel %vm365_vm6, %v360_v43, %v362_v42  ;;  %v516_v59 = vld [vmem:[#allocation2] sm:$0xff] }
 0x12e   : > { %371 = vst [vmem:[#allocation2 + $0x10] sm:$0xf] %v367_v45  ;;  %v515_v7 = vld [vmem:[#allocation2 + $0x30] sm:$0xff] }
 0x12f   : > { %370 = vst [vmem:[#allocation2 + $0x18] sm:$0xf] %v366_v46 }
 0x132   : > { %v401_v51 = vpop.permute.xlu2 %400 }
 0x142   : > { %v479_v49 = vpop.permute.xlu1 %478 }
 0x143   : > { %v484_v50 = vsel %vm482_vm8, %v479_v49, %v481_v48 }
 0x144   : > { %488 = vst [vmem:[#allocation2 + $0x20] sm:$0xf0] %v484_v50 }
 0x14a   : > { %v399_v52 = vpop.permute.xlu1 %398 }
 0x14b   : > { %v404_v53 = vsel %vm402_vm9, %v399_v52, %v401_v51  ;;  %v522_v55 = vld [vmem:[#allocation2 + $0x20] sm:$0xff] }
 0x14c   : > { %408 = vst [vmem:[#allocation2 + $0x10] sm:$0xf0] %v404_v53  ;;  %v528_v56 = vpack.c.bf16 %v522_v55, %v520_v54 }
 0x14e   : > { %567 = vmatpush.bf16.msra.mxu1 %v528_v56 }
 0x153   : > { %v518_v60 = vld [vmem:[#allocation2 + $0x10] sm:$0xff] }
 0x154   : > { %v526_v61 = vpack.c.bf16 %v518_v60, %v516_v59 }
 0x156   : > { %v477_v62 = vpop.permute.xlu0 %476  ;;  %568 = vmatpush.bf16.msra.mxu1 %v526_v61 }
 0x157   : > { %v483_v0 = vsel %vm482_vm8, %v477_v62, %v479_v49 }
 0x158   : > { %487 = vst [vmem:[#allocation2 + $0x8] sm:$0xf0] %v483_v0 }
 0x159   : > { %722 = vmatmul.msk.bf16.vlgmr.msra.gmra.mxu1 %vm537_vm10, %v514_v63 }
 0x15e   : > { %v397_v1 = vpop.permute.xlu0 %396 }
 0x15f   : > { %v403_v2 = vsel %vm402_vm9, %v397_v1, %v399_v52  ;;  %v521_v5 = vld [vmem:[#allocation2 + $0x8] sm:$0xff] }
 0x160   : > { %407 = vst [vmem:[#allocation2 + $0x18] sm:$0xf0] %v403_v2  ;;  %v527_v6 = vpack.c.bf16 %v521_v5, %v519_v3 }
 0x162   : > { %554 = vmatpush.bf16.msra.mxu0 %v527_v6 }
 0x166   : > { %v535_v9 = vpop.permute.xlu0 %534 }
 0x167   : > { %v517_v8 = vld [vmem:[#allocation2 + $0x18] sm:$0xff] }
 0x168   : > { %v525_v4 = vpack.c.bf16 %v517_v8, %v515_v7 }
 0x16a   : > { %555 = vmatpush.bf16.msra.mxu0 %v525_v4 }
 0x16d   : > { %721 = vmatmul.msk.bf16.vlgmr.msra.gmra.mxu0 %vm537_vm10, %v514_v63 }
 0x1d6   : > { %v570_v10 = vpop.f32.mrf.mxu1 }
 0x1d7   : > { %v571_v11 = vadd.f32 %v570_v10, %v535_v9 }
 0x1d9   : > { %v575_v12 = vmax.f32 %v571_v11, 0.0 }
 0x1db   : > { %577 = vst [vmem:[%s260_s29 + $0x8] sm:$0xff] %v575_v12 }
 0x1de   : > { %v572_v13 = vpop.f32.mrf.mxu1 }
 0x1ea   : > { %v557_v14 = vpop.f32.mrf.mxu0 }
 0x1eb   : > { %v558_v16 = vadd.f32 %v557_v14, %v535_v9 }
 0x1ed   : > { %v574_v17 = vmax.f32 %v558_v16, 0.0 }
 0x1ef   : > { %576 = vst [vmem:[%s260_s29] sm:$0xff] %v574_v17 }
 0x1f0   : > { %900 = shalt.err (!%p897_p0)
}
 0x1f1   : > { %736 = dma.vmem_to_hbm [thread:$0]  (%p1075_p5), %s595_s21, 256, %s597_s30, %s579_s9  }
 0x1f2   : > { %v559_v18 = vpop.f32.mrf.mxu0 }
 0x1f3 PF: > { %s608_s8 = sand.u32 1, %s939_s15   ;;  %p747_p3 = pnand %p710_p9, %p1045_p6 }
 0x1f4   : > { %s609_s23 = scalar_lea.sflag [#allocation5], %s608_s8 }
 0x1f5   : > { %p748_p7 = pneg %p747_p3 }
 0x1f7   : > { %934 = dma.done.wait (%p748_p7), %s609_s23, 256  }
 0x1f8   : > { %936 = vsyncadd (%p748_p7), %s609_s23, 4294967040  ;;  %s21_s20 = sadd.s32 1, %s959_s20   ;;  %s1223_s15 = smov %s943_s16 }
 0x1f9   : > { %p18_p10 = scmp.ge.s32.totalorder %s21_s20, 4   ;;  %s1224_s16 = smov %s947_s17 }
 0x1fa   : > { %s1225_s17 = smov %s1084_s14  ;;  %s1226_s18 = smov %s955_s19 }
 0x1fb   : > { %s1227_s19 = smov %s1229_s7  ;;  %20 = sbr.rel (!%p18_p10) target bundleno = 7 (0x7), region = 100 }
 0x200   :  { %615 = vsyncpa [#allocation4], 1 }
 0x201   :  { %617 = vsyncpa [#allocation4 + $0x1], 1 }
 0x202   :  { %618 = vsyncpa [#allocation7], 1 }
 0x203   :  { %619 = vsyncpa [#allocation5], 1 }
 0x204   :  { %621 = vsyncpa [#allocation5 + $0x1], 1 }

</bundles_post_ra>
